<compile_context>
chip_gen: v7x
topology: tpu7x:2x2x1
jax: 0.10.0
libtpu: 0.0.40
codegen_flags: <defaults>
</compile_context>

<pallas_src>
from functools import partial

import jax
import jax.numpy as jnp
import numpy as np
from jax import lax
from jax.experimental import pallas as pl
from jax.experimental.pallas import tpu as pltpu


# ---------------------------------------------------------------------------
# Kernel: one batch tile of images -> log-probabilities.
#   x_ref:    (TB, 256) f32  flattened images, cols 196..255 are zero padding
#   w1_ref:   (256, 256) f32 conv-as-matmul operator (padded from (196,144))
#   w2_ref:   (256, 128) f32 fused avgpool+linear operator (padded from (144,10))
#   mask_ref: (1, 128)  f32  0 on the 10 real logit lanes, -1e30 elsewhere
#   out_ref:  (TB, 128) f32  lane-dense log-softmax slab (first 10 lanes real)
# ---------------------------------------------------------------------------
def net_kernel(x_ref, w1_ref, w2_ref, mask_ref, out_ref):
    # Conv2d(1,1,k=3,valid,no-bias) as a single MXU matmul, fused with ReLU.
    act = jnp.maximum(
        jnp.dot(x_ref[...], w1_ref[...], preferred_element_type=jnp.float32),
        0.0)                                                   # (TB, 256)

    # AvgPool2d(3,3) + flatten + Linear(16,10,no-bias) fused into one matmul;
    # additive mask pushes the 118 padding lanes to ~-1e30.
    logits = (jnp.dot(act, w2_ref[...], preferred_element_type=jnp.float32)
              + mask_ref[...])                                 # (TB, 128)

    # LogSoftmax(dim=1), numerically stable; padding lanes contribute exp(.)=0.
    m = jnp.max(logits, axis=-1, keepdims=True)
    sh = logits - m
    lse = jnp.log(jnp.sum(jnp.exp(sh), axis=-1, keepdims=True))
    out_ref[...] = sh - lse


# ---------------------------------------------------------------------------
# Host-side construction of the fused linear operators (outside the kernel).
# ---------------------------------------------------------------------------
def _build_operators(w_conv, w_fc):
    # Static index scaffolding in numpy (compile-time constants).
    p = np.arange(196)
    pi, pj = p // 14, p % 14            # input pixel coords
    q = np.arange(144)
    qr, qc = q // 12, q % 12            # conv output pixel coords
    di = pi[:, None] - qr[None, :]      # (196, 144)
    dj = pj[:, None] - qc[None, :]
    valid = (di >= 0) & (di < 3) & (dj >= 0) & (dj < 3)
    tap = np.where(valid, di * 3 + dj, 0)

    # Conv-as-matrix: W1[p, q] = w_conv[i-r, j-c] where p=(i,j), q=(r,c).
    w_taps = w_conv.reshape(9)
    w1 = jnp.where(jnp.asarray(valid), w_taps[jnp.asarray(tap)], 0.0)   # (196,144)
    W1 = jnp.zeros((256, 256), jnp.float32).at[:196, :144].set(w1)

    # Fused AvgPool(3,3) + row-major flatten + Linear(16,10):
    #   W2[q=(r,c), n] = (1/9) * w_fc[n, 4*(r//3) + (c//3)]
    fc_col = jnp.asarray(4 * (qr // 3) + (qc // 3))                      # (144,)
    w2 = w_fc.T[fc_col, :] / 9.0                                         # (144,10)
    W2 = jnp.zeros((256, 128), jnp.float32).at[:144, :10].set(w2)

    # Additive lane mask for the log-softmax (only first 10 lanes are real).
    mask = jnp.full((1, 128), -1e30, jnp.float32).at[:, :10].set(0.0)
    return W1, W2, mask


@partial(jax.jit, static_argnames=("block_b",))
def net_forward(x, w_conv, w_fc, *, block_b=128):
    """x: (B, 14, 14) images (each treated as the module's x.view(14,14)),
       w_conv: (3,3) conv1.weight (1,1,3,3 squeezed), w_fc: (10,16) fc1.weight."""
    B = x.shape[0]
    x = x.reshape(B, 196).astype(jnp.float32)
    W1, W2, mask = _build_operators(w_conv.astype(jnp.float32),
                                    w_fc.astype(jnp.float32))

    # Pad batch to a multiple of the tile and features to a lane-dense 256.
    n_blocks = pl.cdiv(B, block_b)
    Bp = n_blocks * block_b
    xp = jnp.zeros((Bp, 256), jnp.float32).at[:B, :196].set(x)

    out = pl.pallas_call(
        net_kernel,
        out_shape=jax.ShapeDtypeStruct((Bp, 128), jnp.float32),
        grid=(n_blocks,),
        in_specs=[
            pl.BlockSpec((block_b, 256), lambda i: (i, 0)),   # images (tiled)
            pl.BlockSpec((256, 256), lambda i: (0, 0)),       # conv operator
            pl.BlockSpec((256, 128), lambda i: (0, 0)),       # pool+fc operator
            pl.BlockSpec((1, 128), lambda i: (0, 0)),         # logit lane mask
        ],
        out_specs=pl.BlockSpec((block_b, 128), lambda i: (i, 0)),
        compiler_params=pltpu.CompilerParams(
            dimension_semantics=("parallel",)),
    )(xp, W1, W2, mask)

    # Slice off batch padding and the 118 padding lanes.
    return out[:B, :10]


# ---------------------------------------------------------------------------
# Pure-JAX reference of the intended PyTorch forward (per image, batched).
# ---------------------------------------------------------------------------
def ref_forward(x, w_conv, w_fc):
    B = x.shape[0]
    xi = x.reshape(B, 1, 14, 14).astype(jnp.float32)
    k = w_conv.reshape(1, 1, 3, 3).astype(jnp.float32)
    conv = lax.conv_general_dilated(xi, k, window_strides=(1, 1), padding="VALID")
    conv = jnp.maximum(conv, 0.0)
    pooled = lax.reduce_window(conv, 0.0, lax.add,
                               (1, 1, 3, 3), (1, 1, 3, 3), "VALID") / 9.0
    feat = pooled.reshape(B, 16)
    logits = feat @ w_fc.astype(jnp.float32).T
    return jax.nn.log_softmax(logits, axis=1)


if __name__ == "__main__":
    key = jax.random.PRNGKey(0)
    kx, kc, kf = jax.random.split(key, 3)

    B = 256  # two 128-row batch tiles -> exercises the parallel grid axis
    x = jax.random.normal(kx, (B, 14, 14), dtype=jnp.float32)
    w_conv = jax.random.uniform(kc, (3, 3), jnp.float32,
                                minval=-1.0 / 3.0, maxval=1.0 / 3.0)  # conv1.weight
    w_fc = jax.random.uniform(kf, (10, 16), jnp.float32,
                              minval=-0.25, maxval=0.25)              # fc1.weight

    out = jax.block_until_ready(net_forward(x, w_conv, w_fc))
    ref = ref_forward(x, w_conv, w_fc)
    np.testing.assert_allclose(np.asarray(out), np.asarray(ref),
                               rtol=1e-4, atol=1e-4)
    print("KERNEL_OK")
</pallas_src>

<mosaic_0001>
module attributes {stable_mosaic.version = 11 : i64} {
  func.func @net_kernel(%arg0: i32, %arg1: memref<128x256xf32, #tpu.memory_space<vmem>>, %arg2: memref<256x256xf32, #tpu.memory_space<vmem>>, %arg3: memref<256x128xf32, #tpu.memory_space<vmem>>, %arg4: memref<1x128xf32, #tpu.memory_space<vmem>>, %arg5: memref<128x128xf32, #tpu.memory_space<vmem>>) attributes {dimension_semantics = [#tpu.dimension_semantics<parallel>], iteration_bounds = array<i64: 2>, scalar_prefetch = 0 : i64, scratch_operands = 0 : i64, tpu.core_type = #tpu.core_type<tc>, window_params = [{transform_indices = @transform_0, window_bounds = array<i64: 128, 256>}, {pipeline_mode = #tpu.pipeline_mode<synchronous>, transform_indices = @transform_1, window_bounds = array<i64: 256, 256>}, {pipeline_mode = #tpu.pipeline_mode<synchronous>, transform_indices = @transform_2, window_bounds = array<i64: 256, 128>}, {pipeline_mode = #tpu.pipeline_mode<synchronous>, transform_indices = @transform_3, window_bounds = array<i64: 1, 128>}, {transform_indices = @transform_4, window_bounds = array<i64: 128, 128>}]} {
    %c0 = arith.constant 0 : index
    %c0_0 = arith.constant 0 : index
    %0 = vector.load %arg1[%c0, %c0_0] : memref<128x256xf32, #tpu.memory_space<vmem>>, vector<128x256xf32>
    %c0_1 = arith.constant 0 : index
    %c0_2 = arith.constant 0 : index
    %1 = vector.load %arg2[%c0_1, %c0_2] : memref<256x256xf32, #tpu.memory_space<vmem>>, vector<256x256xf32>
    %cst = arith.constant dense<0.000000e+00> : vector<128x256xf32>
    %2 = tpu.matmul %0, %1, %cst {dimension_numbers = #tpu.dot_dimension_numbers<[1], [0], [0], [1], [0, 0, 1, 1], [], []>} : vector<128x256xf32>, vector<256x256xf32>, vector<128x256xf32> -> vector<128x256xf32>
    %cst_3 = arith.constant 0.000000e+00 : f32
    %3 = vector.broadcast %cst_3 : f32 to vector<128x256xf32>
    %4 = arith.maximumf %2, %3 : vector<128x256xf32>
    %c0_4 = arith.constant 0 : index
    %c0_5 = arith.constant 0 : index
    %5 = vector.load %arg3[%c0_4, %c0_5] : memref<256x128xf32, #tpu.memory_space<vmem>>, vector<256x128xf32>
    %cst_6 = arith.constant dense<0.000000e+00> : vector<128x128xf32>
    %6 = tpu.matmul %4, %5, %cst_6 {dimension_numbers = #tpu.dot_dimension_numbers<[1], [0], [0], [1], [0, 0, 1, 1], [], []>} : vector<128x256xf32>, vector<256x128xf32>, vector<128x128xf32> -> vector<128x128xf32>
    %c0_7 = arith.constant 0 : index
    %c0_8 = arith.constant 0 : index
    %7 = vector.load %arg4[%c0_7, %c0_8] : memref<1x128xf32, #tpu.memory_space<vmem>>, vector<1x128xf32>
    %8 = vector.broadcast %7 : vector<1x128xf32> to vector<128x128xf32>
    %9 = arith.addf %6, %8 : vector<128x128xf32>
    %cst_9 = arith.constant dense<0xFF800000> : vector<128xf32>
    %10 = vector.multi_reduction <maximumf>, %9, %cst_9 [1] : vector<128x128xf32> to vector<128xf32>
    %11 = vector.shape_cast %10 : vector<128xf32> to vector<128x1xf32>
    %12 = vector.broadcast %11 : vector<128x1xf32> to vector<128x128xf32>
    %13 = arith.subf %9, %12 : vector<128x128xf32>
    %14 = math.exp %13 : vector<128x128xf32>
    %cst_10 = arith.constant dense<0.000000e+00> : vector<128xf32>
    %15 = vector.multi_reduction <add>, %14, %cst_10 [1] : vector<128x128xf32> to vector<128xf32>
    %16 = vector.shape_cast %15 : vector<128xf32> to vector<128x1xf32>
    %17 = math.log %16 : vector<128x1xf32>
    %18 = vector.broadcast %17 : vector<128x1xf32> to vector<128x128xf32>
    %19 = arith.subf %13, %18 : vector<128x128xf32>
    %c0_11 = arith.constant 0 : index
    %c0_12 = arith.constant 0 : index
    %20 = vector.load %arg5[%c0_11, %c0_12] : memref<128x128xf32, #tpu.memory_space<vmem>>, vector<128x128xf32>
    tpu.vector_store %arg5[%c0_11, %c0_12], %19 {strides = array<i32>} : memref<128x128xf32, #tpu.memory_space<vmem>>, vector<128x128xf32>,
    return
  }
  func.func @transform_0(%arg0: i32) -> (i32, i32) {
    %c0_i32 = arith.constant 0 : i32
    %c0_i32_0 = arith.constant 0 : i32
    return %arg0, %c0_i32 : i32, i32
  }
  func.func @transform_1(%arg0: i32) -> (i32, i32) {
    %c0_i32 = arith.constant 0 : i32
    %c0_i32_0 = arith.constant 0 : i32
    %c0_i32_1 = arith.constant 0 : i32
    return %c0_i32, %c0_i32_0 : i32, i32
  }
  func.func @transform_2(%arg0: i32) -> (i32, i32) {
    %c0_i32 = arith.constant 0 : i32
    %c0_i32_0 = arith.constant 0 : i32
    %c0_i32_1 = arith.constant 0 : i32
    return %c0_i32, %c0_i32_0 : i32, i32
  }
  func.func @transform_3(%arg0: i32) -> (i32, i32) {
    %c0_i32 = arith.constant 0 : i32
    %c0_i32_0 = arith.constant 0 : i32
    %c0_i32_1 = arith.constant 0 : i32
    return %c0_i32, %c0_i32_0 : i32, i32
  }
  func.func @transform_4(%arg0: i32) -> (i32, i32) {
    %c0_i32 = arith.constant 0 : i32
    %c0_i32_0 = arith.constant 0 : i32
    return %arg0, %c0_i32 : i32, i32
  }
}

</mosaic_0001>

<bundles_post_ra>
// kernel: net_forward.1
= control target key start
LH: loop header
LB: loop body
LE: loop exit
PB: predicated region body
PF: predicated region fallthrough
CT: control target
= control target key end

     0   :  { %s1204_s15 = smov 0   ;;  %s1714_s0 = inlined_call_operand.vmem [shape: f32[256,256], index: 0, kind: input, shape index: {}]   ;;  %s1715_s1 = inlined_call_operand.vmem [shape: f32[256,256], index: 1, kind: input, shape index: {}]   ;;  %s1716_s2 = inlined_call_operand.vmem [shape: f32[256,128], index: 2, kind: input, shape index: {}]   ;;  %s1717_s3 = inlined_call_operand.vmem [shape: f32[1,128], index: 3, kind: input, shape index: {}]   ;;  %s1718_s4 = inlined_call_operand.vmem [shape: f32[256,128], index: 4, kind: output, shape index: {}]  }
   0x1 LB: > { %s909_s16 = sadd.s32 4294967295, %s1177_s15   ;;  %p913_p0 = scmp.ge.s32.totalorder %s1177_s15, 1  ;;  %s1177_s15 = sphi %s1204_s15, %s14_s15  }
   0x2   : > { %p164_p1 = scmp.lt.s32.totalorder %s1177_s15, 3 }
   0x4   : > { %p165_p2 = pnand %p913_p0, %p164_p1 }
   0x5   : > { %v237_v0 = vld [vmem:[%s1715_s1 + $0x8] sm:$0xff] (!%p165_p2)  ;;  %v239_v1 = vld [vmem:[%s1715_s1 + $0x18] sm:$0xff] (!%p165_p2)  ;;  %v236_v2 = vld [vmem:[%s1715_s1] sm:$0xff] (!%p165_p2)  ;;  %s914_s11 = sshll.u32 (!%p165_p2), %s909_s16, 4 }
   0x6   : > { %168 = sbr.rel (%p165_p2) target bundleno = 880 (0x370), region = 36  ;;  %v1003_v3 = vpack.c.bf16 (!%p165_p2), %v239_v1, %v237_v0  ;;  %v238_v4 = vld [vmem:[%s1715_s1 + $0x10] sm:$0xff] (!%p165_p2)  ;;  %v241_v5 = vld [vmem:[%s1715_s1 + $0x28] sm:$0xff] (!%p165_p2)  ;;  %v243_v6 = vld [vmem:[%s1715_s1 + $0x38] sm:$0xff] (!%p165_p2)  ;;  %p192_p3 = scmp.lt.s32.totalorder (!%p165_p2), %s914_s11, 31 }
   0x7   : > { %v1005_v7 = vpack.c.bf16 (!%p165_p2), %v238_v4, %v236_v2  ;;  %v1007_v8 = vpack.c.bf16 (!%p165_p2), %v243_v6, %v241_v5  ;;  %v240_v9 = vld [vmem:[%s1715_s1 + $0x20] sm:$0xff] (!%p165_p2)  ;;  %v242_v10 = vld [vmem:[%s1715_s1 + $0x30] sm:$0xff] (!%p165_p2)  ;;  %v245_v11 = vld [vmem:[%s1715_s1 + $0x48] sm:$0xff] (!%p165_p2) }
   0x8   : > { %1004 = vmatprep.subr.bf16.mxu0 (!%p165_p2), %v1003_v3  ;;  %v247_v12 = vld [vmem:[%s1715_s1 + $0x58] sm:$0xff] (!%p165_p2)  ;;  %v1009_v13 = vpack.c.bf16 (!%p165_p2), %v242_v10, %v240_v9  ;;  %v244_v15 = vld [vmem:[%s1715_s1 + $0x40] sm:$0xff] (!%p165_p2)  ;;  %v246_v16 = vld [vmem:[%s1715_s1 + $0x50] sm:$0xff] (!%p165_p2) }
   0x9   : > { %1006 = vmatpush1.bf16.msra.mxu0 (!%p165_p2), %v1005_v7  ;;  %v1011_v14 = vpack.c.bf16 (!%p165_p2), %v247_v12, %v245_v11  ;;  %v249_v17 = vld [vmem:[%s1715_s1 + $0x68] sm:$0xff] (!%p165_p2)  ;;  %v251_v18 = vld [vmem:[%s1715_s1 + $0x78] sm:$0xff] (!%p165_p2)  ;;  %v1013_v19 = vpack.c.bf16 (!%p165_p2), %v246_v16, %v244_v15  ;;  %v248_v21 = vld [vmem:[%s1715_s1 + $0x60] sm:$0xff] (!%p165_p2) }
   0xa   : > { %1008 = vmatprep.subr.bf16.mxu0 (!%p165_p2), %v1007_v8  ;;  %v1015_v20 = vpack.c.bf16 (!%p165_p2), %v251_v18, %v249_v17  ;;  %v250_v22 = vld [vmem:[%s1715_s1 + $0x70] sm:$0xff] (!%p165_p2)  ;;  %v253_v23 = vld [vmem:[%s1715_s1 + $0x88] sm:$0xff] (!%p165_p2)  ;;  %v255_v24 = vld [vmem:[%s1715_s1 + $0x98] sm:$0xff] (!%p165_p2) }
   0xb   : > { %v1017_v25 = vpack.c.bf16 (!%p165_p2), %v250_v22, %v248_v21  ;;  %v1019_v26 = vpack.c.bf16 (!%p165_p2), %v255_v24, %v253_v23  ;;  %v252_v27 = vld [vmem:[%s1715_s1 + $0x80] sm:$0xff] (!%p165_p2)  ;;  %v254_v28 = vld [vmem:[%s1715_s1 + $0x90] sm:$0xff] (!%p165_p2)  ;;  %v257_v29 = vld [vmem:[%s1715_s1 + $0xa8] sm:$0xff] (!%p165_p2) }
   0xc   : > { %v259_v30 = vld [vmem:[%s1715_s1 + $0xb8] sm:$0xff] (!%p165_p2)  ;;  %v1021_v31 = vpack.c.bf16 (!%p165_p2), %v254_v28, %v252_v27  ;;  %v256_v33 = vld [vmem:[%s1715_s1 + $0xa0] sm:$0xff] (!%p165_p2)  ;;  %v258_v34 = vld [vmem:[%s1715_s1 + $0xb0] sm:$0xff] (!%p165_p2) }
   0xd   : > { %1010 = vmatpush1.bf16.msra.mxu0 %v1009_v13  ;;  %s1720_s11 = smov (!%p192_p3, %s914_s11), 31  ;;  %v1023_v32 = vpack.c.bf16 %v259_v30, %v257_v29  ;;  %v261_v35 = vld [vmem:[%s1715_s1 + $0xc8] sm:$0xff]  ;;  %v263_v36 = vld [vmem:[%s1715_s1 + $0xd8] sm:$0xff]  ;;  %v1025_v37 = vpack.c.bf16 %v258_v34, %v256_v33  ;;  %v260_v39 = vld [vmem:[%s1715_s1 + $0xc0] sm:$0xff] }
   0xe   : > { %1012 = vmatprep.subr.bf16.mxu0 %v1011_v14  ;;  %s922_s12 = sshll.u32 %s1720_s11, 4  ;;  %v1027_v38 = vpack.c.bf16 %v263_v36, %v261_v35  ;;  %v262_v40 = vld [vmem:[%s1715_s1 + $0xd0] sm:$0xff]  ;;  %v265_v42 = vld [vmem:[%s1715_s1 + $0xe8] sm:$0xff]  ;;  %v267_v43 = vld [vmem:[%s1715_s1 + $0xf8] sm:$0xff]  ;;  %s918_s28 = sshll.u32 %s1720_s11, 3 }
   0xf   : > { %s1296_s24 = scalar_lea.vmem %s1714_s0, %s922_s12  ;;  %v1029_v44 = vpack.c.bf16 %v262_v40, %v260_v39  ;;  %v1031_v45 = vpack.c.bf16 %v267_v43, %v265_v42  ;;  %v264_v46 = vld [vmem:[%s1715_s1 + $0xe0] sm:$0xff]  ;;  %v266_v47 = vld [vmem:[%s1715_s1 + $0xf0] sm:$0xff]  ;;  %v269_v48 = vld [vmem:[%s1715_s1 + $0x108] sm:$0xff]  ;;  %s1677_s5 = scalar_lea.vmem %s1718_s4, %s918_s28 }
  0x10   : > { %v205_v41 = vld [vmem:[%s1296_s24 + $0x8] sm:$0xff]  ;;  %v271_v49 = vld [vmem:[%s1715_s1 + $0x118] sm:$0xff]  ;;  %v1033_v50 = vpack.c.bf16 %v266_v47, %v264_v46  ;;  %v268_v52 = vld [vmem:[%s1715_s1 + $0x100] sm:$0xff] }
  0x11   : > { %1014 = vmatpush1.bf16.msra.mxu0 %v1013_v19  ;;  %364 = vmatprep.mubr.f32.mxu0 %v205_v41  ;;  %v1035_v51 = vpack.c.bf16 %v271_v49, %v269_v48  ;;  %v270_v53 = vld [vmem:[%s1715_s1 + $0x110] sm:$0xff]  ;;  %v273_v54 = vld [vmem:[%s1715_s1 + $0x128] sm:$0xff]  ;;  %v275_v55 = vld [vmem:[%s1715_s1 + $0x138] sm:$0xff] }
  0x12   : > { %1016 = vmatprep.subr.bf16.mxu0 %v1015_v20  ;;  %v272_v56 = vld [vmem:[%s1715_s1 + $0x120] sm:$0xff]  ;;  %v274_v57 = vld [vmem:[%s1715_s1 + $0x130] sm:$0xff]  ;;  %v1037_v58 = vpack.c.bf16 %v270_v53, %v268_v52  ;;  %v277_v59 = vld [vmem:[%s1715_s1 + $0x148] sm:$0xff]  ;;  %v1039_v0 = vpack.c.bf16 %v275_v55, %v273_v54 }
  0x13   : > { %v279_v60 = vld [vmem:[%s1715_s1 + $0x158] sm:$0xff]  ;;  %v509_v61 = vld [vmem:[%s1716_s2 + $0x80] sm:$0xff]  ;;  %v510_v62 = vld [vmem:[%s1716_s2 + $0x88] sm:$0xff]  ;;  %v1041_v11 = vpack.c.bf16 %v274_v57, %v272_v56 }
  0x14   : > { %v493_v63 = vld [vmem:[%s1716_s2] sm:$0xff]  ;;  %v1067_v1 = vpack.c.bf16 %v510_v62, %v509_v61  ;;  %v494_v2 = vld [vmem:[%s1716_s2 + $0x8] sm:$0xff]  ;;  %v511_v3 = vld [vmem:[%s1716_s2 + $0x90] sm:$0xff]  ;;  %v1043_v15 = vpack.c.bf16 %v279_v60, %v277_v59 }
  0x15   : > { %1018 = vmatpush1.bf16.msra.mxu0 %v1017_v25  ;;  %v512_v4 = vld [vmem:[%s1716_s2 + $0x98] sm:$0xff]  ;;  %v1069_v5 = vpack.c.bf16 %v494_v2, %v493_v63  ;;  %v495_v7 = vld [vmem:[%s1716_s2 + $0x10] sm:$0xff]  ;;  %v513_v9 = vld [vmem:[%s1716_s2 + $0xa0] sm:$0xff] }
  0x16   : > { %1020 = vmatprep.subr.bf16.mxu0 %v1019_v26  ;;  %v1071_v6 = vpack.c.bf16 %v512_v4, %v511_v3  ;;  %v496_v8 = vld [vmem:[%s1716_s2 + $0x18] sm:$0xff]  ;;  %1068 = vmatprep.subr.bf16.mxu1 %v1067_v1  ;;  %v514_v10 = vld [vmem:[%s1716_s2 + $0xa8] sm:$0xff]  ;;  %v276_v12 = vld [vmem:[%s1715_s1 + $0x140] sm:$0xff] }
  0x17   : > { %v278_v13 = vld [vmem:[%s1715_s1 + $0x150] sm:$0xff]  ;;  %1070 = vmatpush3.bf16.msra.mxu1 %v1069_v5  ;;  %v1073_v14 = vpack.c.bf16 %v496_v8, %v495_v7  ;;  %v281_v16 = vld [vmem:[%s1715_s1 + $0x168] sm:$0xff]  ;;  %v1075_v17 = vpack.c.bf16 %v514_v10, %v513_v9  ;;  %v497_v18 = vld [vmem:[%s1716_s2 + $0x20] sm:$0xff] }
  0x18   : > { %1072 = vmatprep.subr.bf16.mxu1 %v1071_v6  ;;  %v498_v19 = vld [vmem:[%s1716_s2 + $0x28] sm:$0xff]  ;;  %v283_v20 = vld [vmem:[%s1715_s1 + $0x178] sm:$0xff]  ;;  %v515_v21 = vld [vmem:[%s1716_s2 + $0xb0] sm:$0xff]  ;;  %v1045_v23 = vpack.c.bf16 %v278_v13, %v276_v12 }
  0x19   : > { %1022 = vmatpush1.bf16.msra.mxu0 %v1021_v31  ;;  %v516_v22 = vld [vmem:[%s1716_s2 + $0xb8] sm:$0xff]  ;;  %v280_v24 = vld [vmem:[%s1715_s1 + $0x160] sm:$0xff]  ;;  %v282_v25 = vld [vmem:[%s1715_s1 + $0x170] sm:$0xff]  ;;  %v1077_v26 = vpack.c.bf16 %v498_v19, %v497_v18  ;;  %v1047_v27 = vpack.c.bf16 %v283_v20, %v281_v16 }
  0x1a   : > { %1024 = vmatprep.subr.bf16.mxu0 %v1023_v32  ;;  %v285_v28 = vld [vmem:[%s1715_s1 + $0x188] sm:$0xff]  ;;  %v1079_v29 = vpack.c.bf16 %v516_v22, %v515_v21  ;;  %v499_v30 = vld [vmem:[%s1716_s2 + $0x30] sm:$0xff]  ;;  %v500_v31 = vld [vmem:[%s1716_s2 + $0x38] sm:$0xff]  ;;  %v1049_v35 = vpack.c.bf16 %v282_v25, %v280_v24 }
  0x1b   : > { %1074 = vmatpush3.bf16.msra.mxu1 %v1073_v14  ;;  %v287_v32 = vld [vmem:[%s1715_s1 + $0x198] sm:$0xff]  ;;  %v517_v33 = vld [vmem:[%s1716_s2 + $0xc0] sm:$0xff]  ;;  %v518_v34 = vld [vmem:[%s1716_s2 + $0xc8] sm:$0xff] }
  0x1c   : > { %1076 = vmatprep.subr.bf16.mxu1 %v1075_v17  ;;  %v284_v36 = vld [vmem:[%s1715_s1 + $0x180] sm:$0xff]  ;;  %v1051_v39 = vpack.c.bf16 %v287_v32, %v285_v28  ;;  %v289_v40 = vld [vmem:[%s1715_s1 + $0x1a8] sm:$0xff]  ;;  %v1083_v41 = vpack.c.bf16 %v518_v34, %v517_v33  ;;  %v520_v46 = vld [vmem:[%s1716_s2 + $0xd8] sm:$0xff] }
  0x1d   : > { %1026 = vmatpush1.bf16.msra.mxu0 %v1025_v37  ;;  %v286_v37 = vld [vmem:[%s1715_s1 + $0x190] sm:$0xff]  ;;  %v501_v42 = vld [vmem:[%s1716_s2 + $0x40] sm:$0xff]  ;;  %v502_v43 = vld [vmem:[%s1716_s2 + $0x48] sm:$0xff] }
  0x1e   : > { %1028 = vmatprep.subr.bf16.mxu0 %v1027_v38  ;;  %v1081_v38 = vpack.c.bf16 %v500_v31, %v499_v30  ;;  %v1053_v47 = vpack.c.bf16 %v286_v37, %v284_v36  ;;  %v288_v48 = vld [vmem:[%s1715_s1 + $0x1a0] sm:$0xff]  ;;  %v290_v49 = vld [vmem:[%s1715_s1 + $0x1b0] sm:$0xff]  ;;  %v293_v52 = vld [vmem:[%s1715_s1 + $0x1c8] sm:$0xff] }
  0x1f   : > { %1078 = vmatpush3.bf16.msra.mxu1 %v1077_v26  ;;  %v503_v54 = vld [vmem:[%s1716_s2 + $0x50] sm:$0xff]  ;;  %v504_v55 = vld [vmem:[%s1716_s2 + $0x58] sm:$0xff]  ;;  %v521_v57 = vld [vmem:[%s1716_s2 + $0xe0] sm:$0xff]  ;;  %v1057_v59 = vpack.c.bf16 %v290_v49, %v288_v48 }
  0x20   : > { %1080 = vmatprep.subr.bf16.mxu1 %v1079_v29  ;;  %v295_v56 = vld [vmem:[%s1715_s1 + $0x1d8] sm:$0xff]  ;;  %v292_v60 = vld [vmem:[%s1715_s1 + $0x1c0] sm:$0xff]  ;;  %v1089_v61 = vpack.c.bf16 %v504_v55, %v503_v54  ;;  %v294_v63 = vld [vmem:[%s1715_s1 + $0x1d0] sm:$0xff] }
  0x21   : > { %1030 = vmatpush1.bf16.msra.mxu0 %v1029_v44  ;;  %v291_v44 = vld [vmem:[%s1715_s1 + $0x1b8] sm:$0xff]  ;;  %v1059_v62 = vpack.c.bf16 %v295_v56, %v293_v52  ;;  %v505_v1 = vld [vmem:[%s1716_s2 + $0x60] sm:$0xff]  ;;  %v506_v2 = vld [vmem:[%s1716_s2 + $0x68] sm:$0xff]  ;;  %v1061_v5 = vpack.c.bf16 %v294_v63, %v292_v60 }
  0x22   : > { %1032 = vmatprep.subr.bf16.mxu0 %v1031_v45  ;;  %v519_v45 = vld [vmem:[%s1716_s2 + $0xd0] sm:$0xff]  ;;  %v297_v3 = vld [vmem:[%s1715_s1 + $0x1e8] sm:$0xff]  ;;  %v299_v4 = vld [vmem:[%s1715_s1 + $0x1f8] sm:$0xff]  ;;  %v1093_v6 = vpack.c.bf16 %v506_v2, %v505_v1 }
  0x23   : > { %1082 = vmatpush3.bf16.msra.mxu1 %v1081_v38  ;;  %v1087_v53 = vpack.c.bf16 %v520_v46, %v519_v45  ;;  %v1063_v7 = vpack.c.bf16 %v299_v4, %v297_v3  ;;  %v296_v8 = vld [vmem:[%s1715_s1 + $0x1e0] sm:$0xff]  ;;  %v298_v9 = vld [vmem:[%s1715_s1 + $0x1f0] sm:$0xff]  ;;  %v207_v12 = vld [vmem:[%s1296_s24 + $0x18] sm:$0xff] }
  0x24   : > { %1084 = vmatprep.subr.bf16.mxu1 %v1083_v41  ;;  %v1065_v10 = vpack.c.bf16 %v298_v9, %v296_v8  ;;  %v206_v13 = vld [vmem:[%s1296_s24 + $0x10] sm:$0xff]  ;;  %v209_v14 = vld [vmem:[%s1296_s24 + $0x28] sm:$0xff]  ;;  %v211_v16 = vld [vmem:[%s1296_s24 + $0x38] sm:$0xff] }
  0x25   : > { %1034 = vmatpush1.bf16.msra.mxu0 %v1033_v50  ;;  %v1085_v50 = vpack.c.bf16 %v502_v43, %v501_v42  ;;  %v210_v17 = vld [vmem:[%s1296_s24 + $0x30] sm:$0xff]  ;;  %v213_v18 = vld [vmem:[%s1296_s24 + $0x48] sm:$0xff]  ;;  %v212_v19 = vld [vmem:[%s1296_s24 + $0x40] sm:$0xff] }
  0x26   : > { %1036 = vmatprep.subr.bf16.mxu0 %v1035_v51  ;;  %v1055_v51 = vpack.c.bf16 %v291_v44, %v289_v40  ;;  %v215_v20 = vld [vmem:[%s1296_s24 + $0x58] sm:$0xff]  ;;  %v214_v21 = vld [vmem:[%s1296_s24 + $0x50] sm:$0xff]  ;;  %v217_v22 = vld [vmem:[%s1296_s24 + $0x68] sm:$0xff] }
  0x27   : > { %1086 = vmatpush3.bf16.msra.mxu1 %v1085_v50  ;;  %v219_v24 = vld [vmem:[%s1296_s24 + $0x78] sm:$0xff]  ;;  %v218_v25 = vld [vmem:[%s1296_s24 + $0x70] sm:$0xff]  ;;  %v221_v26 = vld [vmem:[%s1296_s24 + $0x88] sm:$0xff] }
  0x28   : > { %1088 = vmatprep.subr.bf16.mxu1 %v1087_v53  ;;  %v223_v28 = vld [vmem:[%s1296_s24 + $0x98] sm:$0xff]  ;;  %v222_v29 = vld [vmem:[%s1296_s24 + $0x90] sm:$0xff]  ;;  %v225_v30 = vld [vmem:[%s1296_s24 + $0xa8] sm:$0xff] }
  0x29   : > { %1038 = vmatpush1.bf16.msra.mxu0 %v1037_v58  ;;  %v522_v58 = vld [vmem:[%s1716_s2 + $0xe8] sm:$0xff]  ;;  %v224_v31 = vld [vmem:[%s1296_s24 + $0xa0] sm:$0xff]  ;;  %v227_v32 = vld [vmem:[%s1296_s24 + $0xb8] sm:$0xff] }
  0x2a   : > { %1040 = vmatprep.subr.bf16.mxu0 %v1039_v0  ;;  %v1091_v0 = vpack.c.bf16 %v522_v58, %v521_v57  ;;  %v226_v33 = vld [vmem:[%s1296_s24 + $0xb0] sm:$0xff]  ;;  %v229_v34 = vld [vmem:[%s1296_s24 + $0xc8] sm:$0xff]  ;;  %v231_v36 = vld [vmem:[%s1296_s24 + $0xd8] sm:$0xff] }
  0x2b   : > { %1090 = vmatpush3.bf16.msra.mxu1 %v1089_v61  ;;  %v230_v37 = vld [vmem:[%s1296_s24 + $0xd0] sm:$0xff]  ;;  %v233_v38 = vld [vmem:[%s1296_s24 + $0xe8] sm:$0xff]  ;;  %v235_v40 = vld [vmem:[%s1296_s24 + $0xf8] sm:$0xff] }
  0x2c   : > { %1092 = vmatprep.subr.bf16.mxu1 %v1091_v0  ;;  %v234_v41 = vld [vmem:[%s1296_s24 + $0xf0] sm:$0xff]  ;;  %v524_v43 = vld [vmem:[%s1716_s2 + $0xf8] sm:$0xff] }
  0x2d   : > { %1042 = vmatpush1.bf16.msra.mxu0 %v1041_v11  ;;  %v204_v11 = vld [vmem:[%s1296_s24] sm:$0xff]  ;;  %v523_v42 = vld [vmem:[%s1716_s2 + $0xf0] sm:$0xff]  ;;  %v508_v46 = vld [vmem:[%s1716_s2 + $0x78] sm:$0xff] }
  0x2e   : > { %1044 = vmatprep.subr.bf16.mxu0 %v1043_v15  ;;  %v208_v15 = vld [vmem:[%s1296_s24 + $0x20] sm:$0xff]  ;;  %v1095_v44 = vpack.c.bf16 %v524_v43, %v523_v42  ;;  %v507_v45 = vld [vmem:[%s1716_s2 + $0x70] sm:$0xff] }
  0x2f   : > { %1094 = vmatpush3.bf16.msra.mxu1 %v1093_v6 }
  0x30   : > { %1096 = vmatprep.subr.bf16.mxu1 %v1095_v44 }
  0x31   : > { %1046 = vmatpush1.bf16.msra.mxu0 %v1045_v23  ;;  %v216_v23 = vld [vmem:[%s1296_s24 + $0x60] sm:$0xff] }
  0x32   : > { %1048 = vmatprep.subr.bf16.mxu0 %v1047_v27  ;;  %v220_v27 = vld [vmem:[%s1296_s24 + $0x80] sm:$0xff] }
  0x35   : > { %1050 = vmatpush1.bf16.msra.mxu0 %v1049_v35  ;;  %v228_v35 = vld [vmem:[%s1296_s24 + $0xc0] sm:$0xff] }
  0x36   : > { %1052 = vmatprep.subr.bf16.mxu0 %v1051_v39  ;;  %v232_v39 = vld [vmem:[%s1296_s24 + $0xe0] sm:$0xff] }
  0x39   : > { %1054 = vmatpush1.bf16.msra.mxu0 %v1053_v47  ;;  %v1097_v47 = vpack.c.bf16 %v508_v46, %v507_v45 }
  0x3a   : > { %1056 = vmatprep.subr.bf16.mxu0 %v1055_v51 }
  0x3b   : > { %1098 = vmatpush3.bf16.msra.mxu1 %v1097_v47 }
  0x3d   : > { %1058 = vmatpush1.bf16.msra.mxu0 %v1057_v59 }
  0x3e   : > { %1060 = vmatprep.subr.bf16.mxu0 %v1059_v62 }
  0x41   : > { %1062 = vmatpush1.bf16.msra.mxu0 %v1061_v5 }
  0x42   : > { %1064 = vmatprep.subr.bf16.mxu0 %v1063_v7 }
  0x45   : > { %1066 = vmatpush1.bf16.msra.mxu0 %v1065_v10 }
  0x48   : > { %365 = vmatmul.mubr.f32.vlgmr.msra.gmra.mrb[0].mxu0 %v204_v11 }
  0x49   : > { %370 = vmatprep.mubr.f32.mxu0 %v207_v12 }
  0x4c   : > { %371 = vmatmul.mubr.f32.gmra.mrb[2].mxu0 %v206_v13 }
  0x4d   : > { %376 = vmatprep.mubr.f32.mxu0 %v209_v14 }
  0x50   : > { %377 = vmatmul.mubr.f32.gmra.mrb[4].mxu0 %v208_v15 }
  0x51   : > { %382 = vmatprep.mubr.f32.mxu0 %v211_v16 }
  0x54   : > { %383 = vmatmul.mubr.f32.gmra.mrb[6].mxu0 %v210_v17 }
  0x55   : > { %388 = vmatprep.mubr.f32.mxu0 %v213_v18 }
  0x58   : > { %389 = vmatmul.mubr.f32.gmra.mrb[8].mxu0 %v212_v19 }
  0x59   : > { %394 = vmatprep.mubr.f32.mxu0 %v215_v20 }
  0x5c   : > { %395 = vmatmul.mubr.f32.gmra.mrb[10].mxu0 %v214_v21 }
  0x5d   : > { %400 = vmatprep.mubr.f32.mxu0 %v217_v22 }
  0x60   : > { %401 = vmatmul.mubr.f32.gmra.mrb[12].mxu0 %v216_v23 }
  0x61   : > { %406 = vmatprep.mubr.f32.mxu0 %v219_v24 }
  0x64   : > { %407 = vmatmul.mubr.f32.gmra.mrb[14].mxu0 %v218_v25 }
  0x65   : > { %412 = vmatprep.mubr.f32.mxu0 %v221_v26 }
  0x68   : > { %413 = vmatmul.mubr.f32.gmra.mrb[16].mxu0 %v220_v27 }
  0x69   : > { %418 = vmatprep.mubr.f32.mxu0 %v223_v28 }
  0x6c   : > { %419 = vmatmul.mubr.f32.gmra.mrb[18].mxu0 %v222_v29 }
  0x6d   : > { %424 = vmatprep.mubr.f32.mxu0 %v225_v30 }
  0x70   : > { %425 = vmatmul.mubr.f32.gmra.mrb[20].mxu0 %v224_v31 }
  0x71   : > { %430 = vmatprep.mubr.f32.mxu0 %v227_v32 }
  0x74   : > { %431 = vmatmul.mubr.f32.gmra.mrb[22].mxu0 %v226_v33 }
  0x75   : > { %436 = vmatprep.mubr.f32.mxu0 %v229_v34 }
  0x78   : > { %437 = vmatmul.mubr.f32.gmra.mrb[24].mxu0 %v228_v35 }
  0x79   : > { %442 = vmatprep.mubr.f32.mxu0 %v231_v36 }
  0x7c   : > { %443 = vmatmul.mubr.f32.gmra.mrb[26].mxu0 %v230_v37 }
  0x7d   : > { %448 = vmatprep.mubr.f32.mxu0 %v233_v38 }
  0x80   : > { %449 = vmatmul.mubr.f32.gmra.mrb[28].mxu0 %v232_v39 }
  0x81   : > { %454 = vmatprep.mubr.f32.mxu0 %v235_v40 }
  0x84   : > { %455 = vmatmul.mubr.f32.gmra.mrb[30].mxu0 %v234_v41 }
 0x11b   : > { %v366_v48 = vpop.f32.mrb[0].mxu0 }
 0x11c   : > { %v368_v49 = vpop.f32.mrb[1].mxu0  ;;  %v461_v51 = vmax.f32 %v366_v48, 0.0 }
 0x11d   : > { %v462_v50 = vmax.f32 %v368_v49, 0.0 }
 0x11f   : > { %v372_v52 = vpop.f32.mrb[2].mxu0  ;;  %596 = vmatprep.mubr.f32.mxu1 %v462_v50  ;;  %v1543_v50 = vld [vmem:[%s1717_s3] ss:$0 sm:$0xff] }
 0x120   : > { %v374_v53 = vpop.f32.mrb[3].mxu0  ;;  %597 = vmatmul.mubr.f32.vlgmr.msra.gmra.mrb[0].mxu1 %v461_v51  ;;  %v463_v55 = vmax.f32 %v372_v52, 0.0 }
 0x121   : > { %v464_v54 = vmax.f32 %v374_v53, 0.0 }
 0x123   : > { %v378_v56 = vpop.f32.mrb[4].mxu0  ;;  %601 = vmatprep.mubr.f32.mxu1 %v464_v54 }
 0x124   : > { %v380_v57 = vpop.f32.mrb[5].mxu0  ;;  %602 = vmatmul.mubr.f32.gmra.mrb[2].mxu1 %v463_v55  ;;  %v465_v59 = vmax.f32 %v378_v56, 0.0 }
 0x125   : > { %v466_v58 = vmax.f32 %v380_v57, 0.0 }
 0x127   : > { %v384_v60 = vpop.f32.mrb[6].mxu0  ;;  %606 = vmatprep.mubr.f32.mxu1 %v466_v58 }
 0x128   : > { %v386_v61 = vpop.f32.mrb[7].mxu0  ;;  %607 = vmatmul.mubr.f32.gmra.mrb[4].mxu1 %v465_v59  ;;  %v467_v63 = vmax.f32 %v384_v60, 0.0 }
 0x129   : > { %v468_v62 = vmax.f32 %v386_v61, 0.0 }
 0x12b   : > { %v390_v0 = vpop.f32.mrb[8].mxu0  ;;  %611 = vmatprep.mubr.f32.mxu1 %v468_v62 }
 0x12c   : > { %v392_v1 = vpop.f32.mrb[9].mxu0  ;;  %612 = vmatmul.mubr.f32.gmra.mrb[6].mxu1 %v467_v63  ;;  %v469_v3 = vmax.f32 %v390_v0, 0.0 }
 0x12d   : > { %v470_v2 = vmax.f32 %v392_v1, 0.0 }
 0x12f   : > { %v396_v4 = vpop.f32.mrb[10].mxu0  ;;  %616 = vmatprep.mubr.f32.mxu1 %v470_v2 }
 0x130   : > { %v398_v5 = vpop.f32.mrb[11].mxu0  ;;  %617 = vmatmul.mubr.f32.gmra.mrb[8].mxu1 %v469_v3  ;;  %v471_v7 = vmax.f32 %v396_v4, 0.0 }
 0x131   : > { %v472_v6 = vmax.f32 %v398_v5, 0.0 }
 0x133   : > { %v402_v8 = vpop.f32.mrb[12].mxu0  ;;  %621 = vmatprep.mubr.f32.mxu1 %v472_v6 }
 0x134   : > { %v404_v9 = vpop.f32.mrb[13].mxu0  ;;  %622 = vmatmul.mubr.f32.gmra.mrb[10].mxu1 %v471_v7  ;;  %v473_v11 = vmax.f32 %v402_v8, 0.0 }
 0x135   : > { %v474_v10 = vmax.f32 %v404_v9, 0.0 }
 0x137   : > { %v408_v12 = vpop.f32.mrb[14].mxu0  ;;  %626 = vmatprep.mubr.f32.mxu1 %v474_v10 }
 0x138   : > { %v410_v13 = vpop.f32.mrb[15].mxu0  ;;  %627 = vmatmul.mubr.f32.gmra.mrb[12].mxu1 %v473_v11  ;;  %v475_v15 = vmax.f32 %v408_v12, 0.0 }
 0x139   : > { %v476_v14 = vmax.f32 %v410_v13, 0.0 }
 0x13b   : > { %v414_v16 = vpop.f32.mrb[16].mxu0  ;;  %631 = vmatprep.mubr.f32.mxu1 %v476_v14 }
 0x13c   : > { %v416_v17 = vpop.f32.mrb[17].mxu0  ;;  %632 = vmatmul.mubr.f32.gmra.mrb[14].mxu1 %v475_v15  ;;  %v477_v19 = vmax.f32 %v414_v16, 0.0 }
 0x13d   : > { %v478_v18 = vmax.f32 %v416_v17, 0.0 }
 0x13f   : > { %v420_v20 = vpop.f32.mrb[18].mxu0  ;;  %636 = vmatprep.mubr.f32.mxu1 %v478_v18 }
 0x140   : > { %v422_v21 = vpop.f32.mrb[19].mxu0  ;;  %637 = vmatmul.mubr.f32.gmra.mrb[16].mxu1 %v477_v19  ;;  %v479_v23 = vmax.f32 %v420_v20, 0.0 }
 0x141   : > { %v480_v22 = vmax.f32 %v422_v21, 0.0 }
 0x143   : > { %v426_v24 = vpop.f32.mrb[20].mxu0  ;;  %641 = vmatprep.mubr.f32.mxu1 %v480_v22 }
 0x144   : > { %v428_v25 = vpop.f32.mrb[21].mxu0  ;;  %642 = vmatmul.mubr.f32.gmra.mrb[18].mxu1 %v479_v23  ;;  %v481_v27 = vmax.f32 %v426_v24, 0.0 }
 0x145   : > { %v482_v26 = vmax.f32 %v428_v25, 0.0 }
 0x147   : > { %v432_v28 = vpop.f32.mrb[22].mxu0  ;;  %646 = vmatprep.mubr.f32.mxu1 %v482_v26 }
 0x148   : > { %v434_v29 = vpop.f32.mrb[23].mxu0  ;;  %647 = vmatmul.mubr.f32.gmra.mrb[20].mxu1 %v481_v27  ;;  %v483_v31 = vmax.f32 %v432_v28, 0.0 }
 0x149   : > { %v484_v30 = vmax.f32 %v434_v29, 0.0 }
 0x14b   : > { %v438_v32 = vpop.f32.mrb[24].mxu0  ;;  %651 = vmatprep.mubr.f32.mxu1 %v484_v30 }
 0x14c   : > { %v440_v33 = vpop.f32.mrb[25].mxu0  ;;  %652 = vmatmul.mubr.f32.gmra.mrb[22].mxu1 %v483_v31  ;;  %v485_v35 = vmax.f32 %v438_v32, 0.0 }
 0x14d   : > { %v486_v34 = vmax.f32 %v440_v33, 0.0 }
 0x14f   : > { %v444_v36 = vpop.f32.mrb[26].mxu0  ;;  %656 = vmatprep.mubr.f32.mxu1 %v486_v34 }
 0x150   : > { %v446_v37 = vpop.f32.mrb[27].mxu0  ;;  %657 = vmatmul.mubr.f32.gmra.mrb[24].mxu1 %v485_v35  ;;  %v487_v39 = vmax.f32 %v444_v36, 0.0 }
 0x151   : > { %v488_v38 = vmax.f32 %v446_v37, 0.0 }
 0x153   : > { %v450_v40 = vpop.f32.mrb[28].mxu0  ;;  %661 = vmatprep.mubr.f32.mxu1 %v488_v38 }
 0x154   : > { %v452_v41 = vpop.f32.mrb[29].mxu0  ;;  %662 = vmatmul.mubr.f32.gmra.mrb[26].mxu1 %v487_v39  ;;  %v489_v43 = vmax.f32 %v450_v40, 0.0 }
 0x155   : > { %v490_v42 = vmax.f32 %v452_v41, 0.0 }
 0x157   : > { %v456_v44 = vpop.f32.mrb[30].mxu0  ;;  %666 = vmatprep.mubr.f32.mxu1 %v490_v42 }
 0x158   : > { %v458_v45 = vpop.f32.mrb[31].mxu0  ;;  %667 = vmatmul.mubr.f32.gmra.mrb[28].mxu1 %v489_v43  ;;  %v491_v47 = vmax.f32 %v456_v44, 0.0 }
 0x159   : > { %v492_v46 = vmax.f32 %v458_v45, 0.0 }
 0x15b   : > { %671 = vmatprep.mubr.f32.mxu1 %v492_v46 }
 0x15c   : > { %672 = vmatmul.mubr.f32.gmra.mrb[30].mxu1 %v491_v47 }
 0x1f3   : > { %v955_v48 = vpop.f32.mrb[0].mxu1 }
 0x1f4   : > { %v956_v49 = vpop.f32.mrb[1].mxu1 }
 0x1f5   : > { %v957_v51 = vadd.f32 %v956_v49, %v955_v48 }
 0x1f7   : > { %v958_v52 = vpop.f32.mrb[2].mxu1  ;;  %v1546_v53 = vadd.f32 %v957_v51, %v1543_v50 }
 0x1f8   : > { %v959_v54 = vpop.f32.mrb[3].mxu1 }
 0x1f9   : > { %v960_v55 = vadd.f32 %v959_v54, %v958_v52  ;;  %677 = vmax.xlane.f32.xlu0 %v1546_v53 }
 0x1fb   : > { %v961_v56 = vpop.f32.mrb[4].mxu1  ;;  %v1550_v57 = vadd.f32 %v960_v55, %v1543_v50 }
 0x1fc   : > { %v962_v58 = vpop.f32.mrb[5].mxu1 }
 0x1fd   : > { %v963_v59 = vadd.f32 %v962_v58, %v961_v56  ;;  %679 = vmax.xlane.f32.xlu0 %v1550_v57 }
 0x1ff   : > { %v964_v60 = vpop.f32.mrb[6].mxu1  ;;  %v1554_v61 = vadd.f32 %v963_v59, %v1543_v50 }
 0x200   : > { %v965_v62 = vpop.f32.mrb[7].mxu1 }
 0x201   : > { %v966_v63 = vadd.f32 %v965_v62, %v964_v60  ;;  %681 = vmax.xlane.f32.xlu1 %v1554_v61 }
 0x203   : > { %v967_v0 = vpop.f32.mrb[8].mxu1  ;;  %v1558_v1 = vadd.f32 %v966_v63, %v1543_v50 }
 0x204   : > { %v968_v2 = vpop.f32.mrb[9].mxu1 }
 0x205   : > { %v969_v3 = vadd.f32 %v968_v2, %v967_v0  ;;  %683 = vmax.xlane.f32.xlu1 %v1558_v1 }
 0x207   : > { %v970_v4 = vpop.f32.mrb[10].mxu1  ;;  %v1562_v5 = vadd.f32 %v969_v3, %v1543_v50 }
 0x208   : > { %v971_v6 = vpop.f32.mrb[11].mxu1 }
 0x209   : > { %v972_v7 = vadd.f32 %v971_v6, %v970_v4  ;;  %685 = vmax.xlane.f32.xlu0 %v1562_v5 }
 0x20b   : > { %v973_v8 = vpop.f32.mrb[12].mxu1  ;;  %v1566_v9 = vadd.f32 %v972_v7, %v1543_v50 }
 0x20c   : > { %v974_v10 = vpop.f32.mrb[13].mxu1 }
 0x20d   : > { %v975_v11 = vadd.f32 %v974_v10, %v973_v8  ;;  %687 = vmax.xlane.f32.xlu1 %v1566_v9 }
 0x20f   : > { %v976_v12 = vpop.f32.mrb[14].mxu1  ;;  %v1570_v13 = vadd.f32 %v975_v11, %v1543_v50 }
 0x210   : > { %v977_v14 = vpop.f32.mrb[15].mxu1 }
 0x211   : > { %v978_v15 = vadd.f32 %v977_v14, %v976_v12  ;;  %689 = vmax.xlane.f32.xlu0 %v1570_v13 }
 0x213   : > { %v979_v16 = vpop.f32.mrb[16].mxu1  ;;  %v1574_v17 = vadd.f32 %v978_v15, %v1543_v50 }
 0x214   : > { %v980_v18 = vpop.f32.mrb[17].mxu1 }
 0x215   : > { %v981_v19 = vadd.f32 %v980_v18, %v979_v16  ;;  %691 = vmax.xlane.f32.xlu1 %v1574_v17 }
 0x217   : > { %v982_v20 = vpop.f32.mrb[18].mxu1  ;;  %v1578_v21 = vadd.f32 %v981_v19, %v1543_v50 }
 0x218   : > { %v983_v22 = vpop.f32.mrb[19].mxu1 }
 0x219   : > { %v984_v23 = vadd.f32 %v983_v22, %v982_v20  ;;  %693 = vmax.xlane.f32.xlu0 %v1578_v21 }
 0x21b   : > { %v985_v24 = vpop.f32.mrb[20].mxu1  ;;  %v1582_v25 = vadd.f32 %v984_v23, %v1543_v50 }
 0x21c   : > { %v986_v26 = vpop.f32.mrb[21].mxu1 }
 0x21d   : > { %v987_v27 = vadd.f32 %v986_v26, %v985_v24  ;;  %695 = vmax.xlane.f32.xlu1 %v1582_v25 }
 0x21f   : > { %v988_v28 = vpop.f32.mrb[22].mxu1  ;;  %v1586_v29 = vadd.f32 %v987_v27, %v1543_v50 }
 0x220   : > { %v989_v30 = vpop.f32.mrb[23].mxu1 }
 0x221   : > { %v990_v31 = vadd.f32 %v989_v30, %v988_v28  ;;  %697 = vmax.xlane.f32.xlu0 %v1586_v29 }
 0x223   : > { %v991_v32 = vpop.f32.mrb[24].mxu1  ;;  %v1590_v33 = vadd.f32 %v990_v31, %v1543_v50 }
 0x224   : > { %v992_v34 = vpop.f32.mrb[25].mxu1 }
 0x225   : > { %v993_v35 = vadd.f32 %v992_v34, %v991_v32  ;;  %699 = vmax.xlane.f32.xlu1 %v1590_v33 }
 0x227   : > { %v994_v36 = vpop.f32.mrb[26].mxu1  ;;  %v1594_v37 = vadd.f32 %v993_v35, %v1543_v50 }
 0x228   : > { %v995_v38 = vpop.f32.mrb[27].mxu1 }
 0x229   : > { %v996_v39 = vadd.f32 %v995_v38, %v994_v36  ;;  %701 = vmax.xlane.f32.xlu0 %v1594_v37 }
 0x22b   : > { %v997_v40 = vpop.f32.mrb[28].mxu1  ;;  %v1598_v41 = vadd.f32 %v996_v39, %v1543_v50 }
 0x22c   : > { %v998_v42 = vpop.f32.mrb[29].mxu1 }
 0x22d   : > { %v999_v43 = vadd.f32 %v998_v42, %v997_v40  ;;  %703 = vmax.xlane.f32.xlu1 %v1598_v41 }
 0x22f   : > { %v1000_v44 = vpop.f32.mrb[30].mxu1  ;;  %v1602_v45 = vadd.f32 %v999_v43, %v1543_v50 }
 0x230   : > { %v1001_v46 = vpop.f32.mrb[31].mxu1 }
 0x231   : > { %v1002_v47 = vadd.f32 %v1001_v46, %v1000_v44  ;;  %705 = vmax.xlane.f32.xlu0 %v1602_v45 }
 0x233   : > { %v1606_v48 = vadd.f32 %v1002_v47, %v1543_v50 }
 0x235   : > { %707 = vmax.xlane.f32.xlu1 %v1606_v48 }
 0x286   : > { %v678_v49 = vpop.xlane.xlu0 %677 }
 0x287   : > { %v1610_v51 = vsub.f32 %v1546_v53, %v678_v49 }
 0x289   : > { %v725_v52 = vmul.f32 1.442695, %v1610_v51 }
 0x28a   : > { %v680_v54 = vpop.xlane.xlu0 %679 }
 0x28b   : > { %1107 = vpow2.f32 %v725_v52  ;;  %v1614_v55 = vsub.f32 %v1550_v57, %v680_v54 }
 0x28d   : > { %v727_v56 = vmul.f32 1.442695, %v1614_v55 }
 0x28e   : > { %v682_v58 = vpop.xlane.xlu1 %681 }
 0x28f   : > { %1109 = vpow2.f32 %v727_v56  ;;  %v1618_v50 = vsub.f32 %v1554_v61, %v682_v58 }
 0x291   : > { %v729_v59 = vmul.f32 1.442695, %v1618_v50 }
 0x292   : > { %v684_v60 = vpop.xlane.xlu1 %683 }
 0x293   : > { %1111 = vpow2.f32 %v729_v59  ;;  %v1622_v53 = vsub.f32 %v1558_v1, %v684_v60 }
 0x295   : > { %v1108_v62 = vpop.eup %1107  ;;  %v731_v63 = vmul.f32 1.442695, %v1622_v53 }
 0x296   : > { %v686_v0 = vpop.xlane.xlu0 %685  ;;  %757 = vadd.xlane.f32.xlu0 %v1108_v62 }
 0x297   : > { %1113 = vpow2.f32 %v731_v63  ;;  %v1626_v57 = vsub.f32 %v1562_v5, %v686_v0 }
 0x299   : > { %v1110_v2 = vpop.eup %1109  ;;  %v733_v61 = vmul.f32 1.442695, %v1626_v57 }
 0x29a   : > { %v688_v3 = vpop.xlane.xlu1 %687  ;;  %759 = vadd.xlane.f32.xlu1 %v1110_v2 }
 0x29b   : > { %1115 = vpow2.f32 %v733_v61  ;;  %v1630_v4 = vsub.f32 %v1566_v9, %v688_v3 }
 0x29d   : > { %v1112_v1 = vpop.eup %1111  ;;  %v735_v6 = vmul.f32 1.442695, %v1630_v4 }
 0x29e   : > { %v690_v7 = vpop.xlane.xlu0 %689  ;;  %761 = vadd.xlane.f32.xlu0 %v1112_v1 }
 0x29f   : > { %1117 = vpow2.f32 %v735_v6  ;;  %v1634_v8 = vsub.f32 %v1570_v13, %v690_v7 }
 0x2a1   : > { %v1114_v5 = vpop.eup %1113  ;;  %v737_v10 = vmul.f32 1.442695, %v1634_v8 }
 0x2a2   : > { %v692_v11 = vpop.xlane.xlu1 %691  ;;  %763 = vadd.xlane.f32.xlu1 %v1114_v5 }
 0x2a3   : > { %1119 = vpow2.f32 %v737_v10  ;;  %v1638_v12 = vsub.f32 %v1574_v17, %v692_v11 }
 0x2a5   : > { %v1116_v9 = vpop.eup %1115  ;;  %v739_v14 = vmul.f32 1.442695, %v1638_v12 }
 0x2a6   : > { %v694_v15 = vpop.xlane.xlu0 %693  ;;  %765 = vadd.xlane.f32.xlu0 %v1116_v9 }
 0x2a7   : > { %1121 = vpow2.f32 %v739_v14  ;;  %v1642_v16 = vsub.f32 %v1578_v21, %v694_v15 }
 0x2a9   : > { %v1118_v13 = vpop.eup %1117  ;;  %v741_v18 = vmul.f32 1.442695, %v1642_v16 }
 0x2aa   : > { %v696_v19 = vpop.xlane.xlu1 %695  ;;  %767 = vadd.xlane.f32.xlu1 %v1118_v13 }
 0x2ab   : > { %1123 = vpow2.f32 %v741_v18  ;;  %v1646_v20 = vsub.f32 %v1582_v25, %v696_v19 }
 0x2ad   : > { %v1120_v17 = vpop.eup %1119  ;;  %v743_v22 = vmul.f32 1.442695, %v1646_v20 }
 0x2ae   : > { %v698_v23 = vpop.xlane.xlu0 %697  ;;  %769 = vadd.xlane.f32.xlu0 %v1120_v17 }
 0x2af   : > { %1125 = vpow2.f32 %v743_v22  ;;  %v1650_v24 = vsub.f32 %v1586_v29, %v698_v23 }
 0x2b1   : > { %v1122_v21 = vpop.eup %1121  ;;  %v745_v26 = vmul.f32 1.442695, %v1650_v24 }
 0x2b2   : > { %v700_v27 = vpop.xlane.xlu1 %699  ;;  %771 = vadd.xlane.f32.xlu1 %v1122_v21 }
 0x2b3   : > { %1127 = vpow2.f32 %v745_v26  ;;  %v1654_v28 = vsub.f32 %v1590_v33, %v700_v27 }
 0x2b5   : > { %v1124_v25 = vpop.eup %1123  ;;  %v747_v30 = vmul.f32 1.442695, %v1654_v28 }
 0x2b6   : > { %v702_v31 = vpop.xlane.xlu0 %701  ;;  %773 = vadd.xlane.f32.xlu0 %v1124_v25 }
 0x2b7   : > { %1129 = vpow2.f32 %v747_v30  ;;  %v1658_v32 = vsub.f32 %v1594_v37, %v702_v31 }
 0x2b9   : > { %v1126_v29 = vpop.eup %1125  ;;  %v749_v34 = vmul.f32 1.442695, %v1658_v32 }
 0x2ba   : > { %v704_v35 = vpop.xlane.xlu1 %703  ;;  %775 = vadd.xlane.f32.xlu1 %v1126_v29 }
 0x2bb   : > { %1131 = vpow2.f32 %v749_v34  ;;  %v1662_v36 = vsub.f32 %v1598_v41, %v704_v35 }
 0x2bd   : > { %v1128_v33 = vpop.eup %1127  ;;  %v751_v38 = vmul.f32 1.442695, %v1662_v36 }
 0x2be   : > { %777 = vadd.xlane.f32.xlu0 %v1128_v33  ;;  %v706_v39 = vpop.xlane.xlu0 %705 }
 0x2bf   : > { %1133 = vpow2.f32 %v751_v38  ;;  %v1666_v40 = vsub.f32 %v1602_v45, %v706_v39 }
 0x2c1   : > { %v1130_v37 = vpop.eup %1129  ;;  %v753_v42 = vmul.f32 1.442695, %v1666_v40 }
 0x2c2   : > { %779 = vadd.xlane.f32.xlu1 %v1130_v37  ;;  %v708_v43 = vpop.xlane.xlu1 %707 }
 0x2c3   : > { %1135 = vpow2.f32 %v753_v42  ;;  %v1670_v44 = vsub.f32 %v1606_v48, %v708_v43 }
 0x2c5   : > { %v1132_v41 = vpop.eup %1131  ;;  %v755_v46 = vmul.f32 1.442695, %v1670_v44 }
 0x2c6   : > { %781 = vadd.xlane.f32.xlu0 %v1132_v41 }
 0x2c7   : > { %1137 = vpow2.f32 %v755_v46 }
 0x2c9   : > { %v1134_v47 = vpop.eup %1133 }
 0x2ca   : > { %783 = vadd.xlane.f32.xlu1 %v1134_v47 }
 0x2cd   : > { %v1136_v49 = vpop.eup %1135 }
 0x2ce   : > { %785 = vadd.xlane.f32.xlu0 %v1136_v49 }
 0x2d1   : > { %v1138_v45 = vpop.eup %1137 }
 0x2d2   : > { %787 = vadd.xlane.f32.xlu1 %v1138_v45 }
 0x323   : > { %v758_v52 = vpop.xlane.xlu0 %757 }
 0x324   : > { %1139 = vlog2.f32 %v758_v52 }
 0x327   : > { %v760_v54 = vpop.xlane.xlu1 %759 }
 0x328   : > { %1141 = vlog2.f32 %v760_v54 }
 0x32b   : > { %v762_v56 = vpop.xlane.xlu0 %761 }
 0x32c   : > { %1143 = vlog2.f32 %v762_v56 }
 0x32e   : > { %v1140_v48 = vpop.eup %1139 }
 0x32f   : > { %v790_v58 = vmul.f32 0.6931472, %v1140_v48  ;;  %v764_v59 = vpop.xlane.xlu1 %763 }
 0x330   : > { %1145 = vlog2.f32 %v764_v59 }
 0x331   : > { %v821_v60 = vsub.f32 %v1610_v51, %v790_v58 }
 0x332   : > { %v1142_v62 = vpop.eup %1141 }
 0x333   : > { %837 = vst [vmem:[%s1677_s5] sm:$0xff] %v821_v60  ;;  %v792_v63 = vmul.f32 0.6931472, %v1142_v62  ;;  %v766_v0 = vpop.xlane.xlu0 %765 }
 0x334   : > { %1147 = vlog2.f32 %v766_v0 }
 0x335   : > { %v822_v2 = vsub.f32 %v1614_v55, %v792_v63 }
 0x336   : > { %v1144_v61 = vpop.eup %1143 }
 0x337   : > { %838 = vst [vmem:[%s1677_s5 + $0x8] sm:$0xff] %v822_v2  ;;  %v794_v3 = vmul.f32 0.6931472, %v1144_v61  ;;  %v768_v1 = vpop.xlane.xlu1 %767 }
 0x338   : > { %1149 = vlog2.f32 %v768_v1 }
 0x339   : > { %v823_v6 = vsub.f32 %v1618_v50, %v794_v3 }
 0x33a   : > { %v1146_v7 = vpop.eup %1145 }
 0x33b   : > { %839 = vst [vmem:[%s1677_s5 + $0x10] sm:$0xff] %v823_v6  ;;  %v796_v5 = vmul.f32 0.6931472, %v1146_v7  ;;  %v770_v51 = vpop.xlane.xlu0 %769 }
 0x33c   : > { %1151 = vlog2.f32 %v770_v51 }
 0x33d   : > { %v824_v10 = vsub.f32 %v1622_v53, %v796_v5 }
 0x33e   : > { %v1148_v11 = vpop.eup %1147 }
 0x33f   : > { %840 = vst [vmem:[%s1677_s5 + $0x18] sm:$0xff] %v824_v10  ;;  %v798_v9 = vmul.f32 0.6931472, %v1148_v11  ;;  %v772_v55 = vpop.xlane.xlu1 %771 }
 0x340   : > { %1153 = vlog2.f32 %v772_v55 }
 0x341   : > { %v825_v14 = vsub.f32 %v1626_v57, %v798_v9 }
 0x342   : > { %v1150_v15 = vpop.eup %1149 }
 0x343   : > { %841 = vst [vmem:[%s1677_s5 + $0x20] sm:$0xff] %v825_v14  ;;  %v800_v13 = vmul.f32 0.6931472, %v1150_v15  ;;  %v774_v50 = vpop.xlane.xlu0 %773 }
 0x344   : > { %1155 = vlog2.f32 %v774_v50 }
 0x345   : > { %v826_v18 = vsub.f32 %v1630_v4, %v800_v13 }
 0x346   : > { %v1152_v19 = vpop.eup %1151 }
 0x347   : > { %842 = vst [vmem:[%s1677_s5 + $0x28] sm:$0xff] %v826_v18  ;;  %v802_v17 = vmul.f32 0.6931472, %v1152_v19  ;;  %v776_v53 = vpop.xlane.xlu1 %775 }
 0x348   : > { %1157 = vlog2.f32 %v776_v53 }
 0x349   : > { %v827_v22 = vsub.f32 %v1634_v8, %v802_v17 }
 0x34a   : > { %v1154_v23 = vpop.eup %1153 }
 0x34b   : > { %843 = vst [vmem:[%s1677_s5 + $0x30] sm:$0xff] %v827_v22  ;;  %v804_v21 = vmul.f32 0.6931472, %v1154_v23  ;;  %v778_v57 = vpop.xlane.xlu0 %777 }
 0x34c   : > { %1159 = vlog2.f32 %v778_v57 }
 0x34d   : > { %v828_v26 = vsub.f32 %v1638_v12, %v804_v21 }
 0x34e   : > { %v1156_v27 = vpop.eup %1155 }
 0x34f   : > { %844 = vst [vmem:[%s1677_s5 + $0x38] sm:$0xff] %v828_v26  ;;  %v806_v25 = vmul.f32 0.6931472, %v1156_v27  ;;  %v780_v4 = vpop.xlane.xlu1 %779 }
 0x350   : > { %1161 = vlog2.f32 %v780_v4 }
 0x351   : > { %v829_v30 = vsub.f32 %v1642_v16, %v806_v25 }
 0x352   : > { %v1158_v31 = vpop.eup %1157 }
 0x353   : > { %845 = vst [vmem:[%s1677_s5 + $0x40] sm:$0xff] %v829_v30  ;;  %v808_v29 = vmul.f32 0.6931472, %v1158_v31  ;;  %v782_v8 = vpop.xlane.xlu0 %781 }
 0x354   : > { %1163 = vlog2.f32 %v782_v8 }
 0x355   : > { %v830_v34 = vsub.f32 %v1646_v20, %v808_v29 }
 0x356   : > { %v1160_v35 = vpop.eup %1159 }
 0x357   : > { %846 = vst [vmem:[%s1677_s5 + $0x48] sm:$0xff] %v830_v34  ;;  %v810_v33 = vmul.f32 0.6931472, %v1160_v35  ;;  %v784_v12 = vpop.xlane.xlu1 %783 }
 0x358   : > { %1165 = vlog2.f32 %v784_v12 }
 0x359   : > { %v831_v38 = vsub.f32 %v1650_v24, %v810_v33 }
 0x35a   : > { %v1162_v39 = vpop.eup %1161 }
 0x35b   : > { %847 = vst [vmem:[%s1677_s5 + $0x50] sm:$0xff] %v831_v38  ;;  %v812_v16 = vmul.f32 0.6931472, %v1162_v39  ;;  %v786_v37 = vpop.xlane.xlu0 %785 }
 0x35c   : > { %1167 = vlog2.f32 %v786_v37 }
 0x35d   : > { %v832_v42 = vsub.f32 %v1654_v28, %v812_v16 }
 0x35e   : > { %v1164_v43 = vpop.eup %1163 }
 0x35f   : > { %848 = vst [vmem:[%s1677_s5 + $0x58] sm:$0xff] %v832_v42  ;;  %v814_v20 = vmul.f32 0.6931472, %v1164_v43  ;;  %v788_v41 = vpop.xlane.xlu1 %787 }
 0x360   : > { %1169 = vlog2.f32 %v788_v41 }
 0x361   : > { %v833_v46 = vsub.f32 %v1658_v32, %v814_v20 }
 0x362   : > { %v1166_v47 = vpop.eup %1165 }
 0x363   : > { %849 = vst [vmem:[%s1677_s5 + $0x60] sm:$0xff] %v833_v46  ;;  %v816_v24 = vmul.f32 0.6931472, %v1166_v47 }
 0x365   : > { %v834_v49 = vsub.f32 %v1662_v36, %v816_v24 }
 0x366   : > { %v1168_v45 = vpop.eup %1167 }
 0x367   : > { %850 = vst [vmem:[%s1677_s5 + $0x68] sm:$0xff] %v834_v49  ;;  %v818_v52 = vmul.f32 0.6931472, %v1168_v45 }
 0x369   : > { %v835_v54 = vsub.f32 %v1666_v40, %v818_v52 }
 0x36a   : > { %v1170_v28 = vpop.eup %1169 }
 0x36b   : > { %851 = vst [vmem:[%s1677_s5 + $0x70] sm:$0xff] %v835_v54  ;;  %v820_v56 = vmul.f32 0.6931472, %v1170_v28 }
 0x36d   : > { %v836_v48 = vsub.f32 %v1670_v44, %v820_v56 }
 0x36f   : > { %852 = vst [vmem:[%s1677_s5 + $0x78] sm:$0xff] %v836_v48 }
 0x370 PF: > { %s14_s15 = sadd.s32 1, %s1177_s15  }
 0x371   : > { %p11_p4 = scmp.ge.s32.totalorder %s14_s15, 4  }
 0x373   :  { %13 = sbr.rel (!%p11_p4) target bundleno = 1 (0x1), region = 66 }

</bundles_post_ra>
